<compile_context>
chip_gen: v6e
topology: v6e:2x2x1
jax: 0.10.0
libtpu: 0.0.40
codegen_flags: <defaults>
</compile_context>

<pallas_src>
import jax
import jax.numpy as jnp
from jax.experimental import pallas as pl
from jax.experimental.pallas import tpu as pltpu


def _round_up(x, m):
    return pl.cdiv(x, m) * m


def _make_kernel(n_cols, kc, needs_col_mask):
    """Builds the kernel body; n_cols / kc / needs_col_mask are static Python values."""

    def kernel(adj_ref, sup_ref, x_ref, b_ref, out_ref, acc_ref):
        k = pl.program_id(1)

        @pl.when(k == 0)
        def _():
            acc_ref[...] = jnp.zeros_like(acc_ref)

        # Load adjacency tile (upcast-on-load so bf16 adjacency still accumulates in f32).
        adj = adj_ref[...].astype(jnp.float32)
        if needs_col_mask:
            # Last column chunk may read past the (unpadded) adjacency; zero those lanes.
            col_ids = k * kc + jax.lax.broadcasted_iota(jnp.int32, adj.shape, 1)
            adj = jnp.where(col_ids < n_cols, adj, 0.0)

        # Partial score on the MXU: (TM, KC) @ (KC, 1) -> (TM, 1), f32 accumulation.
        acc_ref[...] += jnp.dot(adj, sup_ref[...], preferred_element_type=jnp.float32)

        @pl.when(k == pl.num_programs(1) - 1)
        def _():
            gate = jnp.tanh(acc_ref[...] + b_ref[0])           # (TM, 1), EUP tanh
            out_ref[...] = (x_ref[...] * gate).astype(out_ref.dtype)  # lane-dense store

    return kernel


def self_attention_pooling(adjacency, input_feature, weight, bias, *, tm=512, kc_max=2048):
    """adjacency: (N, N); input_feature: (N, D); weight: (D, 1); bias: scalar-ish."""
    n, d = input_feature.shape
    assert adjacency.shape == (n, n)
    assert weight.shape == (d, 1)

    # support = X @ W : tiny GEMV done in the wrapper (XLA), passed as an (N, 1) column.
    support = input_feature.astype(jnp.float32) @ weight.astype(jnp.float32)   # (N, 1)

    # Row tile: multiple of 8 (sublane), clamped to the problem size.  Row remainder is
    # handled by the partial last block (OOB output rows are dropped on write-back).
    tm = max(8, (int(tm) // 8) * 8)
    tm = int(min(tm, _round_up(n, 8)))

    # Column chunking of the score reduction.
    if n <= kc_max:
        kc = n                      # full-width chunk: block last dim == full array dim
        num_k = 1
        needs_col_mask = False
        sup_in = support            # (N, 1), no padding needed
    else:
        kc = int(min(kc_max, _round_up(n, 128)))
        kc = (kc // 128) * 128      # lane-dense chunk
        num_k = int(pl.cdiv(n, kc))
        needs_col_mask = (n % kc) != 0
        # Pad only the small (N, 1) support so the last chunk never reads garbage.
        sup_in = jnp.zeros((num_k * kc, 1), jnp.float32).at[:n, :].set(support)

    # Feature dim: pad to a lane-dense multiple of 128 only when necessary (fast path
    # skips the pad + final slice when already aligned).
    if d % 128 == 0:
        d_pad = d
        x_in = input_feature
    else:
        d_pad = int(_round_up(d, 128))
        x_in = jnp.zeros((n, d_pad), input_feature.dtype).at[:, :d].set(input_feature)

    # Pass the adjacency through untouched — no O(N^2) padded copy.  bf16 stays bf16
    # (halves the dominant HBM stream); anything else is normalized to f32.
    if adjacency.dtype in (jnp.float32, jnp.bfloat16):
        adj_in = adjacency
    else:
        adj_in = adjacency.astype(jnp.float32)

    b = jnp.asarray(bias, jnp.float32).reshape((1,))

    grid = (int(pl.cdiv(n, tm)), num_k)
    kernel = _make_kernel(n, kc, needs_col_mask)

    out = pl.pallas_call(
        kernel,
        out_shape=jax.ShapeDtypeStruct((n, d_pad), input_feature.dtype),
        grid_spec=pltpu.PrefetchScalarGridSpec(
            num_scalar_prefetch=0,
            grid=grid,
            in_specs=[
                pl.BlockSpec((tm, kc), lambda i, k: (i, k)),          # adjacency tile
                pl.BlockSpec((kc, 1), lambda i, k: (k, 0)),           # support column chunk
                pl.BlockSpec((tm, d_pad), lambda i, k: (i, 0)),       # x row tile (k-resident)
                pl.BlockSpec(memory_space=pltpu.MemorySpace.SMEM),    # bias scalar in SMEM
            ],
            out_specs=pl.BlockSpec((tm, d_pad), lambda i, k: (i, 0)),
            scratch_shapes=[pltpu.VMEM((tm, 1), jnp.float32)],        # score accumulator
        ),
        compiler_params=pltpu.CompilerParams(
            # Row tiles are independent -> shard across TensorCores (v7x megacore);
            # column axis is the reduction -> "arbitrary", kept last.
            dimension_semantics=("parallel", "arbitrary"),
        ),
    )(adj_in, sup_in, x_in, b)

    return out if d_pad == d else out[:, :d]


def reference(adjacency, input_feature, weight, bias):
    support = input_feature @ weight                         # (N, 1)
    score = adjacency @ support + jnp.reshape(bias, (1, 1))  # (N, 1)
    attn = jnp.tanh(jnp.squeeze(score))                      # (N,)
    return input_feature * attn[:, None]                     # (N, D)


if __name__ == "__main__":
    key = jax.random.PRNGKey(0)
    k_adj, k_x, k_w, k_b = jax.random.split(key, 4)

    N = 16   # number of graph nodes
    D = 32   # input_dim

    # Symmetric, dense adjacency.
    a = jax.random.uniform(k_adj, (N, N), dtype=jnp.float32)
    adjacency = (a + a.T) * 0.5
    input_feature = jax.random.normal(k_x, (N, D), dtype=jnp.float32)

    # Deterministic GraphConvolution(input_dim, 1) parameters (glorot-style scale).
    weight = jax.random.normal(k_w, (D, 1), dtype=jnp.float32) * (1.0 / jnp.sqrt(D))
    bias = jax.random.normal(k_b, (1,), dtype=jnp.float32) * 0.01

    out = self_attention_pooling(adjacency, input_feature, weight, bias)
    out = jax.block_until_ready(out)

    ref = reference(adjacency, input_feature, weight, bias)
    assert out.shape == (N, D)
    assert jnp.allclose(out, ref, atol=1e-5, rtol=1e-5), "mismatch vs reference"

    print("KERNEL_OK")
</pallas_src>

<mosaic_0001>
module attributes {stable_mosaic.version = 11 : i64} {
  func.func @kernel(%arg0: i32, %arg1: i32, %arg2: memref<16x16xf32, #tpu.memory_space<vmem>>, %arg3: memref<16x1xf32, #tpu.memory_space<vmem>>, %arg4: memref<16x128xf32, #tpu.memory_space<vmem>>, %arg5: memref<1xf32, #tpu.memory_space<smem>>, %arg6: memref<16x128xf32, #tpu.memory_space<vmem>>, %arg7: memref<16x1xf32, #tpu.memory_space<vmem>>) attributes {dimension_semantics = [#tpu.dimension_semantics<parallel>, #tpu.dimension_semantics<arbitrary>], iteration_bounds = array<i64: 1, 1>, scalar_prefetch = 0 : i64, scratch_operands = 1 : i64, tpu.core_type = #tpu.core_type<tc>, window_params = [{transform_indices = @transform_0, window_bounds = array<i64: 16, 16>}, {transform_indices = @transform_1, window_bounds = array<i64: 16, 1>}, {transform_indices = @transform_2, window_bounds = array<i64: 16, 128>}, {transform_indices = @transform_3, window_bounds = array<i64: 1>}, {transform_indices = @transform_4, window_bounds = array<i64: 16, 128>}]} {
    %c0_i32 = arith.constant 0 : i32
    %0 = arith.cmpi eq, %arg1, %c0_i32 : i32
    %1 = arith.extui %0 : i1 to i32
    %c0_i32_0 = arith.constant 0 : i32
    %2 = arith.cmpi ne, %1, %c0_i32_0 : i32
    scf.if %2 {
      %cst_10 = arith.constant 0.000000e+00 : f32
      %12 = vector.broadcast %cst_10 : f32 to vector<16x1xf32>
      %c0_11 = arith.constant 0 : index
      %c0_12 = arith.constant 0 : index
      %13 = vector.load %arg7[%c0_11, %c0_12] : memref<16x1xf32, #tpu.memory_space<vmem>>, vector<16x1xf32>
      tpu.vector_store %arg7[%c0_11, %c0_12], %12 {strides = array<i32>} : memref<16x1xf32, #tpu.memory_space<vmem>>, vector<16x1xf32>,
    } else {
    }
    %c0 = arith.constant 0 : index
    %c0_1 = arith.constant 0 : index
    %3 = vector.load %arg2[%c0, %c0_1] : memref<16x16xf32, #tpu.memory_space<vmem>>, vector<16x16xf32>
    %c0_2 = arith.constant 0 : index
    %c0_3 = arith.constant 0 : index
    %4 = vector.load %arg7[%c0_2, %c0_3] : memref<16x1xf32, #tpu.memory_space<vmem>>, vector<16x1xf32>
    %c0_4 = arith.constant 0 : index
    %c0_5 = arith.constant 0 : index
    %5 = vector.load %arg3[%c0_4, %c0_5] : memref<16x1xf32, #tpu.memory_space<vmem>>, vector<16x1xf32>
    %cst = arith.constant dense<0.000000e+00> : vector<16x1xf32>
    %6 = tpu.matmul %3, %5, %cst {dimension_numbers = #tpu.dot_dimension_numbers<[1], [0], [0], [1], [0, 0, 1, 1], [], []>} : vector<16x16xf32>, vector<16x1xf32>, vector<16x1xf32> -> vector<16x1xf32>
    %7 = arith.addf %4, %6 : vector<16x1xf32>
    %c0_6 = arith.constant 0 : index
    %c0_7 = arith.constant 0 : index
    %8 = vector.load %arg7[%c0_6, %c0_7] : memref<16x1xf32, #tpu.memory_space<vmem>>, vector<16x1xf32>
    tpu.vector_store %arg7[%c0_6, %c0_7], %7 {strides = array<i32>} : memref<16x1xf32, #tpu.memory_space<vmem>>, vector<16x1xf32>,
    %c0_i32_8 = arith.constant 0 : i32
    %9 = arith.cmpi eq, %arg1, %c0_i32_8 : i32
    %10 = arith.extui %9 : i1 to i32
    %c0_i32_9 = arith.constant 0 : i32
    %11 = arith.cmpi ne, %10, %c0_i32_9 : i32
    scf.if %11 {
      %c0_10 = arith.constant 0 : index
      %c0_11 = arith.constant 0 : index
      %12 = vector.load %arg7[%c0_10, %c0_11] : memref<16x1xf32, #tpu.memory_space<vmem>>, vector<16x1xf32>
      %c0_12 = arith.constant 0 : index
      %13 = memref.load %arg5[%c0_12] : memref<1xf32, #tpu.memory_space<smem>>
      %14 = vector.broadcast %13 : f32 to vector<16x1xf32>
      %15 = arith.addf %12, %14 : vector<16x1xf32>
      %16 = math.tanh %15 : vector<16x1xf32>
      %c0_13 = arith.constant 0 : index
      %c0_14 = arith.constant 0 : index
      %17 = vector.load %arg4[%c0_13, %c0_14] : memref<16x128xf32, #tpu.memory_space<vmem>>, vector<16x128xf32>
      %18 = vector.broadcast %16 : vector<16x1xf32> to vector<16x128xf32>
      %19 = arith.mulf %17, %18 : vector<16x128xf32>
      %c0_15 = arith.constant 0 : index
      %c0_16 = arith.constant 0 : index
      %20 = vector.load %arg6[%c0_15, %c0_16] : memref<16x128xf32, #tpu.memory_space<vmem>>, vector<16x128xf32>
      tpu.vector_store %arg6[%c0_15, %c0_16], %19 {strides = array<i32>} : memref<16x128xf32, #tpu.memory_space<vmem>>, vector<16x128xf32>,
    } else {
    }
    return
  }
  func.func @transform_0(%arg0: i32, %arg1: i32) -> (i32, i32) {
    %c0_i32 = arith.constant 0 : i32
    return %arg0, %arg1 : i32, i32
  }
  func.func @transform_1(%arg0: i32, %arg1: i32) -> (i32, i32) {
    %c0_i32 = arith.constant 0 : i32
    %c0_i32_0 = arith.constant 0 : i32
    return %arg1, %c0_i32 : i32, i32
  }
  func.func @transform_2(%arg0: i32, %arg1: i32) -> (i32, i32) {
    %c0_i32 = arith.constant 0 : i32
    %c0_i32_0 = arith.constant 0 : i32
    return %arg0, %c0_i32 : i32, i32
  }
  func.func @transform_3(%arg0: i32, %arg1: i32) -> i32 {
    %c0_i32 = arith.constant 0 : i32
    %c0_i32_0 = arith.constant 0 : i32
    return %c0_i32 : i32
  }
  func.func @transform_4(%arg0: i32, %arg1: i32) -> (i32, i32) {
    %c0_i32 = arith.constant 0 : i32
    %c0_i32_0 = arith.constant 0 : i32
    return %arg0, %c0_i32 : i32, i32
  }
}

</mosaic_0001>

<bundles_post_ra>
// kernel: tpu_custom_call.1
= control target key start
LH: loop header
LB: loop body
LE: loop exit
PB: predicated region body
PF: predicated region fallthrough
CT: control target
= control target key end

     0   :  { %10 = vsyncpa [#allocation5], 0  ;;  %s307_s0 = inlined_call_operand.vmem [shape: f32[16,16], index: 0, kind: input, shape index: {}]   ;;  %s308_s1 = inlined_call_operand.vmem [shape: f32[16,1], index: 1, kind: input, shape index: {}]   ;;  %s309_s2 = inlined_call_operand.hbm [shape: f32[16,128], index: 2, kind: input, shape index: {}]   ;;  %s310_s3 = inlined_call_operand.<no memory space> [shape: f32[1], index: 3, kind: input, shape index: {}]   ;;  %s311_s4 = inlined_call_operand.hbm [shape: f32[16,128], index: 4, kind: output, shape index: {}]  }
   0x1   :  { %11 = vsyncpa [#allocation6], 0  ;;  %s245_s15 = smov [#allocation4]  }
   0x2   :  { %s21_s16 = sshll.u32 %s245_s15, 4  ;;  %s22_s16 = int_to_ptr.vmem [resolvable:$true] %s21_s16 }
   0x3   :  { %s209_s17 = scalar_lea.vmem %s22_s16, 256  ;;  %p214_p1 = scmp.lt.s32.totalorder %s22_s16, %s22_s16 }
   0x4   :  { %p210_p0 = scmp.ne.s32.totalorder %s22_s16, %s209_s17  ;;  %p215_p2 = scmp.lt.s32.totalorder %s209_s17, %s209_s17 }
   0x6   :  { %p216_p3 = por %p215_p2, %p214_p1 }
   0x8   :  { %p217_p4 = pnand %p216_p3, %p210_p0 }
   0xa   :  { %220 = shalt.err (!%p217_p4)
}
   0xb   :  { %s246_s18 = smov 128   ;;  %s247_s19 = smov 8  }
   0xc   :  { %27 = dma.hbm_to_vmem [thread:$0]  %s309_s2, 256, %s22_s16, [#allocation5], %s246_s18, %s246_s18, %s247_s19  }
   0xd   :  { %241 = dma.done.wait [#allocation5], 256  }
   0xe   :  { %242 = vsyncadd [#allocation5], 4294967040  ;;  %vm37_vm0 = vcmask 7168   ;;  %v248_v0 = vmov 0.0   ;;  %vm46_vm1 = vcmask 130048   ;;  %v45_v1 = vld [vmem:[%s308_s1 + $0x8] sm:$0xff]  ;;  %v139_v14 = vstv %s310_s3 }
   0xf   :  { %39 = vst.msk [vmem:[#allocation2 + $0x8] sm:$0xff] %vm37_vm0, %v248_v0  ;;  %38 = vst.msk [vmem:[#allocation2] sm:$0xff] %vm37_vm0, %v248_v0  ;;  %v44_v2 = vld [vmem:[%s308_s1] sm:$0xff]  ;;  %183 = vmatprep.subr.mxu0 %v45_v1  ;;  %v41_v4 = vld [vmem:[%s307_s0 + $0x8] sm:$0xff]  ;;  %v249_v5 = vmov 0  }
  0x10   :  { %v40_v3 = vld [vmem:[%s307_s0] sm:$0xff]  ;;  %184 = vmatpush3.msra.mxu0 %v45_v1  ;;  %196 = vset.pattern.permute.xlu0 %v249_v5  ;;  %v144_v19 = vld [vmem:[#allocation4] sm:$0xff]  ;;  %v145_v22 = vld [vmem:[#allocation4 + $0x8] sm:$0xff]  ;;  %s250_s0 = smov [#allocation7]  }
  0x11   :  { %187 = vmatprep.mubr.msk.f32.mxu0 %vm46_vm1, %v40_v3  ;;  %185 = vmatprep.subr.mxu0 %v44_v2  ;;  %s165_s30 = sshll.u32 %s250_s0, 4  ;;  %s166_s30 = int_to_ptr.vmem [resolvable:$true] %s165_s30 }
  0x12   :  { %186 = vmatpush3.msra.mxu0 %v44_v2  ;;  %s221_s3 = scalar_lea.vmem %s166_s30, 256  ;;  %p226_p6 = scmp.lt.s32.totalorder %s166_s30, %s166_s30 }
  0x13   :  { %188 = vmatmul.mubr.msk.f32.vlgmr.msra.gmra.mxu0 %vm46_vm1, %v41_v4  ;;  %p222_p5 = scmp.ne.s32.totalorder %s166_s30, %s221_s3  ;;  %p227_p7 = scmp.lt.s32.totalorder %s221_s3, %s221_s3 }
  0x15   :  { %p228_p8 = por %p227_p7, %p226_p6 }
  0x16   :  { %v43_v6 = vld [vmem:[#allocation2 + $0x8] sm:$0xff]  ;;  %v42_v8 = vld [vmem:[#allocation2] sm:$0xff] }
  0x17   :  { %p229_p9 = pnand %p228_p8, %p222_p5 }
  0xd3   :  { %v189_v7 = vpop.f32.mrf.mxu0 }
  0xd4   :  { %v129_v9 = vadd.f32 %v189_v7, %v43_v6 }
  0xd5   :  { %v119_v10 = vpop.f32.mrf.mxu0 }
  0xd6   :  { %132 = vst.msk [vmem:[#allocation2 + $0x8] sm:$0xff] %vm37_vm0, %v129_v9  ;;  %v128_v11 = vadd.f32 %v119_v10, %v42_v8 }
  0xd8   :  { %131 = vst.msk [vmem:[#allocation2] sm:$0xff] %vm37_vm0, %v128_v11 }
  0xdd   :  { %v137_v13 = vld [vmem:[#allocation2 + $0x8] sm:$0xff] }
  0xde   :  { %v141_v16 = vadd.f32 %v139_v14, %v137_v13 }
  0xdf   :  { %v136_v12 = vld [vmem:[#allocation2] sm:$0xff] }
  0xe0   :  { %v140_v15 = vadd.f32 %v139_v14, %v136_v12 }
  0xe2   :  { %197 = vtanh.f32 %v140_v15 }
  0xe3   :  { %199 = vtanh.f32 %v141_v16 }
  0xef   :  { %v198_v17 = vpop.eup %197 }
  0xf0   :  { %148 = vperm.xlu0 %196, %v198_v17   ;;  %v200_v18 = vpop.eup %199 }
  0xf4   :  { %153 = vperm.xlu0 %196, %v200_v18  }
 0x16b   :  { %v149_v20 = vpop.permute.xlu0 %148 }
 0x16c   :  { %v156_v21 = vmul.f32 %v149_v20, %v144_v19 }
 0x16e   :  { %158 = vst [vmem:[#allocation7] sm:$0xff] %v156_v21 }
 0x16f   :  { %v154_v23 = vpop.permute.xlu0 %153 }
 0x170   :  { %v157_v24 = vmul.f32 %v154_v23, %v145_v22 }
 0x172   :  { %159 = vst [vmem:[#allocation7 + $0x8] sm:$0xff] %v157_v24 }
 0x173   :  { %232 = shalt.err (!%p229_p9)
}
 0x174   :  { %171 = dma.vmem_to_hbm [thread:$0]  %s166_s30, 256, %s311_s4, [#allocation6], %s246_s18, %s246_s18, %s247_s19  }
 0x175   :  { %243 = dma.done.wait [#allocation6], 256  }
 0x176   :  { %244 = vsyncadd [#allocation6], 4294967040 }
 0x177   :  { %175 = vsyncpa [#allocation5], 1 }
 0x178   :  { %176 = vsyncpa [#allocation6], 1 }

</bundles_post_ra>
